<compile_context>
chip_gen: v5e
topology: v5e:2x2
jax: 0.10.0
libtpu: 0.0.40
codegen_flags: <defaults>
</compile_context>

<pallas_src>
import functools

import jax
import jax.numpy as jnp
import numpy as np
from jax import lax
from jax.experimental import pallas as pl
from jax.experimental.pallas import tpu as pltpu


def make_divisible(v, divisor=8, min_value=1):
    if min_value is None:
        min_value = divisor
    new_v = max(min_value, int(v + divisor / 2) // divisor * divisor)
    if new_v < 0.9 * v:
        new_v += divisor
    return new_v


def _fold_bn(gamma, beta, mean, var, eps=1e-5):
    scale = gamma / jnp.sqrt(var + eps)
    bias = beta - mean * scale
    return scale, bias


# ----------------------------- Pallas kernel -------------------------------
def _dsconv_kernel(xm_ref, xt_ref, xb_ref, wdw_ref, dwb_ref, wpw_ref, pwb_ref,
                   o_ref, acc_ref, *, compute_dtype):
    # xm_ref : (1, TH, W, C)   main rows of the (unpadded) NHWC input tile
    # xt_ref : (1, 1,  W, C)   row above the tile (border-clamped, gated here)
    # xb_ref : (1, 1,  W, C)   row below the tile (border-clamped, gated here)
    # wdw_ref: (3, 3, 1, C)    depthwise 3x3 weights (BN scale pre-folded)
    # dwb_ref: (1, C)  f32     BN bias after the depthwise conv
    # wpw_ref: (C, Cout)       pointwise weights (BN scale pre-folded, MXU dt)
    # pwb_ref: (1, Cout) f32   BN bias after the pointwise conv
    # o_ref  : (1, TH*W, Cout) flattened output rows of this tile
    # acc_ref: (TH, W, C) f32  persistent scratch (fully rewritten every step)
    cdt = compute_dtype
    i = pl.program_id(1)

    xm = xm_ref[0].astype(cdt)                       # (TH, W, C)
    th, w, c = xm.shape

    # Halo rows: their BlockSpec indices were clamped at the image border, so
    # gate them to zero on the first / last row tile (== the conv's zero pad).
    gate_t = jnp.where(i == 0, 0.0, 1.0).astype(cdt)
    gate_b = jnp.where(i == pl.num_programs(1) - 1, 0.0, 1.0).astype(cdt)
    xt = xt_ref[0].astype(cdt) * gate_t              # (1, W, C)
    xb = xb_ref[0].astype(cdt) * gate_b              # (1, W, C)

    wdw = wdw_ref[...].astype(cdt)                   # (3, 3, 1, C)

    def shift_w(x):
        # x_m1[..., j, :] = x[..., j-1, :] (zero at j == 0)
        # x_p1[..., j, :] = x[..., j+1, :] (zero at j == W-1)
        zcol = jnp.zeros_like(x[:, :1, :])
        x_m1 = jnp.concatenate([zcol, x[:, :w - 1, :]], axis=1)
        x_p1 = jnp.concatenate([x[:, 1:, :], zcol], axis=1)
        return x_m1, x_p1

    def taps(dy, x_m1, x_0, x_p1):
        # one row of the 3x3 stencil; every width tap is lane-aligned, the
        # (1, C) weight rows broadcast over sublanes.
        return x_m1 * wdw[dy, 0] + x_0 * wdw[dy, 1] + x_p1 * wdw[dy, 2]

    # Hoisted width shifts (shared by all three conv rows).
    xm_m1, xm_p1 = shift_w(xm)
    xt_m1, xt_p1 = shift_w(xt)
    xb_m1, xb_p1 = shift_w(xb)

    # Three independent partial-term chains (good VALU ILP, no 9-deep chain):
    #   center[r] -> output row r, up[r] -> output row r+1, down[r] -> r-1.
    center = taps(1, xm_m1, xm, xm_p1)
    up = taps(0, xm_m1, xm, xm_p1)
    down = taps(2, xm_m1, xm, xm_p1)
    top = taps(0, xt_m1, xt, xt_p1)                  # halo above -> out row 0
    bot = taps(2, xb_m1, xb, xb_p1)                  # halo below -> out row th-1

    # Assemble the depthwise result row-range by row-range (leading-axis ref
    # stores are cheap; no concatenate, no copy of the whole window).
    if th == 1:
        acc_ref[0:1] = (center[0:1] + top + bot).astype(jnp.float32)
    else:
        acc_ref[0:1] = (center[0:1] + down[1:2] + top).astype(jnp.float32)
        acc_ref[th - 1:th] = (center[th - 1:th] + up[th - 2:th - 1]
                              + bot).astype(jnp.float32)
        if th > 2:
            acc_ref[1:th - 1] = (center[1:th - 1] + up[0:th - 2]
                                 + down[2:th]).astype(jnp.float32)

    # BN bias + ReLU6 (scale already folded into wdw).
    y = jnp.clip(acc_ref[...] + dwb_ref[...], 0.0, 6.0)

    # Pointwise 1x1 conv as an MXU matmul over channels (f32 accumulation).
    lhs = y.reshape(th * w, c).astype(wpw_ref.dtype)
    out = jnp.dot(lhs, wpw_ref[...], preferred_element_type=jnp.float32)
    o_ref[0] = (out + pwb_ref[...]).astype(o_ref.dtype)


# --------------------------- tiling / VMEM sizing ---------------------------
def _vmem_capacity_bytes(default=64 * 1024 * 1024):
    try:
        info = pltpu.get_tpu_info()
        cap = getattr(info, "vmem_capacity_bytes", None)
        if cap:
            return int(cap)
    except Exception:
        pass
    return default


def _tile_vmem_bytes(th, w, c, cout, io_b, cd_b, mxu_b, out_b):
    # double-buffered pipeline copies of every BlockSpec operand
    stream_in = (th + 2) * w * c * io_b              # main rows + 2 halo rows
    weights = (9 * c + c + cout) * 4 + c * cout * mxu_b
    stream_out = th * w * cout * out_b
    pipelined = 2 * (stream_in + weights + stream_out)
    # persistent f32 accumulator scratch
    scratch = th * w * c * 4
    # in-kernel live values: upcast input, 2 width-shifted copies, 3 partial
    # terms, f32 clipped activations, bf16 matmul lhs, f32 matmul result.
    work = th * w * c * (6 * cd_b + 4 + mxu_b) + th * w * cout * 4
    return pipelined + scratch + work


def _pick_row_tile(n, h, w, c, cout, io_b, cd_b, mxu_b, out_b, budget_bytes):
    cands = [th for th in range(1, h + 1)
             if h % th == 0 and ((th * w) % 8 == 0 or th == h)]
    fitting = [th for th in cands
               if _tile_vmem_bytes(th, w, c, cout, io_b, cd_b, mxu_b, out_b)
               <= budget_bytes]
    pool = fitting if fitting else [min(cands)]
    # prefer >= 2 total grid steps so both v7x TensorCores get work at batch 1
    multi = [th for th in pool if n * (h // th) >= 2]
    return max(multi) if multi else max(pool)


# ------------------------------- wrappers -----------------------------------
def flexible_dsconv_nhwc(x_nhwc, params, width_mult=1.0, *, row_tile=None,
                         compute_dtype=jnp.float32, mxu_dtype=jnp.bfloat16,
                         out_dtype=None, vmem_budget_bytes=None):
    """Fused FlexibleDSConv forward, NHWC in / NHWC out, inference-mode BN.

    HBM I/O uses the input's dtype (bf16 recommended); the depthwise math runs
    in `compute_dtype` (f32 default, bf16 optional on v6e/v7x); the 1x1 conv
    runs on the MXU in `mxu_dtype` with f32 accumulation.
    """
    N, H, W, Cin_basic = x_nhwc.shape
    Cout_basic = params["pw_weight"].shape[0]

    # flexible-width channel selection (flex=[True, True])
    eff_in = min(int(make_divisible(Cin_basic * width_mult)), Cin_basic)
    eff_out = min(int(make_divisible(Cout_basic * width_mult)), Cout_basic)

    x = x_nhwc[..., :eff_in]
    io_dtype = x.dtype
    out_dtype = out_dtype if out_dtype is not None else io_dtype

    # --- fold BN scales straight into the conv weights ---
    dw_scale, dw_bias = _fold_bn(params["dw_gamma"][:eff_in],
                                 params["dw_beta"][:eff_in],
                                 params["dw_mean"][:eff_in],
                                 params["dw_var"][:eff_in])
    # torch depthwise weight (Cin, 1, 3, 3) -> (3, 3, 1, Cin) lane-aligned rows
    w_dw = jnp.transpose(params["dw_weight"][:eff_in, 0], (1, 2, 0))
    w_dw = (w_dw.astype(jnp.float32) * dw_scale).reshape(3, 3, 1, eff_in)
    dw_bias = dw_bias.reshape(1, eff_in).astype(jnp.float32)

    pw_scale, pw_bias = _fold_bn(params["pw_gamma"][:eff_out],
                                 params["pw_beta"][:eff_out],
                                 params["pw_mean"][:eff_out],
                                 params["pw_var"][:eff_out])
    # torch pointwise weight (Cout, Cin, 1, 1) -> (Cin, Cout), scaled per col
    w_pw = jnp.transpose(params["pw_weight"][:eff_out, :eff_in, 0, 0], (1, 0))
    w_pw = (w_pw.astype(jnp.float32) * pw_scale[None, :]).astype(mxu_dtype)
    pw_bias = pw_bias.reshape(1, eff_out).astype(jnp.float32)

    io_b = np.dtype(io_dtype).itemsize
    cd_b = np.dtype(compute_dtype).itemsize
    mxu_b = np.dtype(mxu_dtype).itemsize
    out_b = np.dtype(out_dtype).itemsize

    cap = _vmem_capacity_bytes()
    if vmem_budget_bytes is None:
        # ~58 MiB on 128 MiB parts (v5e/v6e), ~29 MiB on 64 MiB parts (v7x)
        vmem_budget_bytes = int(cap * 0.45)

    if row_tile is None:
        row_tile = _pick_row_tile(N, H, W, eff_in, eff_out,
                                  io_b, cd_b, mxu_b, out_b, vmem_budget_bytes)
    th = int(row_tile)
    assert H % th == 0, f"row_tile={th} must divide H={H}"
    assert (th * W) % 8 == 0 or th == H, \
        "flattened output tile (row_tile * W) must be a multiple of 8"
    n_tiles = H // th

    tile_bytes = _tile_vmem_bytes(th, W, eff_in, eff_out,
                                  io_b, cd_b, mxu_b, out_b)
    vmem_limit = int(min(cap * 3 // 4,
                         max(tile_bytes + (6 << 20), 20 << 20)))

    kernel = functools.partial(_dsconv_kernel, compute_dtype=compute_dtype)

    out_flat = pl.pallas_call(
        kernel,
        out_shape=jax.ShapeDtypeStruct((N, H * W, eff_out), out_dtype),
        grid=(N, n_tiles),
        in_specs=[
            # main rows of the (unpadded) image covered by this tile
            pl.BlockSpec((1, th, W, eff_in), lambda n, i: (n, i, 0, 0)),
            # 1-row halos above / below the tile; indices clamped at the image
            # border and gated to zero in-kernel (replaces the wrapper pad)
            pl.BlockSpec((1, 1, W, eff_in),
                         lambda n, i: (n, jnp.maximum(i * th - 1, 0), 0, 0)),
            pl.BlockSpec((1, 1, W, eff_in),
                         lambda n, i: (n, jnp.minimum((i + 1) * th, H - 1),
                                       0, 0)),
            # resident weights / biases
            # TODO(synk): pipeline_mode=pl.Buffered(1) would stop these from
            # being double-buffered; left at the default for portability.
            pl.BlockSpec((3, 3, 1, eff_in), lambda n, i: (0, 0, 0, 0)),
            pl.BlockSpec((1, eff_in), lambda n, i: (0, 0)),
            pl.BlockSpec((eff_in, eff_out), lambda n, i: (0, 0)),
            pl.BlockSpec((1, eff_out), lambda n, i: (0, 0)),
        ],
        out_specs=pl.BlockSpec((1, th * W, eff_out), lambda n, i: (n, i, 0)),
        scratch_shapes=[pltpu.VMEM((th, W, eff_in), jnp.float32)],
        compiler_params=pltpu.CompilerParams(
            dimension_semantics=("parallel", "parallel"),
            vmem_limit_bytes=vmem_limit),
    )(x, x, x, w_dw, dw_bias, w_pw, pw_bias)

    return out_flat.reshape(N, H, W, eff_out)


def flexible_dsconv(x_nchw, params, width_mult=1.0, *,
                    io_dtype=jnp.bfloat16, **kwargs):
    """PyTorch-layout convenience wrapper (NCHW f32 in, NCHW f32 out)."""
    # TODO(synk): in a full NHWC/bf16 pipeline these transposes/casts belong
    # to the neighbouring layers; call flexible_dsconv_nhwc directly there.
    x_nhwc = jnp.transpose(x_nchw, (0, 2, 3, 1)).astype(io_dtype)
    out = flexible_dsconv_nhwc(x_nhwc, params, width_mult, **kwargs)
    return jnp.transpose(out.astype(jnp.float32), (0, 3, 1, 2))


# ----------------------------- pure-JAX reference ---------------------------
def flexible_dsconv_ref(x_nchw, params, width_mult=1.0, *,
                        io_dtype=jnp.float32, mxu_dtype=jnp.float32):
    N, Cin_basic, H, W = x_nchw.shape
    Cout_basic = params["pw_weight"].shape[0]
    eff_in = min(int(make_divisible(Cin_basic * width_mult)), Cin_basic)
    eff_out = min(int(make_divisible(Cout_basic * width_mult)), Cout_basic)

    x = jnp.transpose(x_nchw, (0, 2, 3, 1))[..., :eff_in]
    x = x.astype(io_dtype).astype(jnp.float32)
    k_dw = jnp.transpose(params["dw_weight"][:eff_in, 0],
                         (1, 2, 0))[:, :, None, :].astype(jnp.float32)
    y = lax.conv_general_dilated(
        x, k_dw, window_strides=(1, 1), padding="SAME",
        dimension_numbers=("NHWC", "HWIO", "NHWC"),
        feature_group_count=eff_in, precision=lax.Precision.HIGHEST)
    s, b = _fold_bn(params["dw_gamma"][:eff_in], params["dw_beta"][:eff_in],
                    params["dw_mean"][:eff_in], params["dw_var"][:eff_in])
    y = jnp.clip(y * s + b, 0.0, 6.0)

    s, b = _fold_bn(params["pw_gamma"][:eff_out], params["pw_beta"][:eff_out],
                    params["pw_mean"][:eff_out], params["pw_var"][:eff_out])
    w_pw = jnp.transpose(params["pw_weight"][:eff_out, :eff_in, 0, 0], (1, 0))
    w_pw = (w_pw.astype(jnp.float32) * s[None, :]).astype(mxu_dtype)
    y = jnp.einsum("nhwc,co->nhwo", y.astype(mxu_dtype), w_pw,
                   preferred_element_type=jnp.float32,
                   precision=lax.Precision.HIGHEST)
    y = y + b
    return jnp.transpose(y, (0, 3, 1, 2))


if __name__ == "__main__":
    # channels chosen as multiples of 8 so make_divisible(C * 1.0) == C
    N, Cin, Cout, H, W = 2, 8, 16, 16, 16
    width_mult = 1.0

    key = jax.random.PRNGKey(0)
    keys = jax.random.split(key, 11)
    x = jax.random.normal(keys[0], (N, Cin, H, W), dtype=jnp.float32)

    params = {
        "dw_weight": jax.random.normal(keys[1], (Cin, 1, 3, 3), jnp.float32) * 0.2,
        "dw_gamma": 1.0 + 0.1 * jax.random.normal(keys[2], (Cin,), jnp.float32),
        "dw_beta": 0.1 * jax.random.normal(keys[3], (Cin,), jnp.float32),
        "dw_mean": 0.1 * jax.random.normal(keys[4], (Cin,), jnp.float32),
        "dw_var": jnp.abs(jax.random.normal(keys[5], (Cin,), jnp.float32)) + 0.5,
        "pw_weight": jax.random.normal(keys[6], (Cout, Cin, 1, 1), jnp.float32) * 0.2,
        "pw_gamma": 1.0 + 0.1 * jax.random.normal(keys[7], (Cout,), jnp.float32),
        "pw_beta": 0.1 * jax.random.normal(keys[8], (Cout,), jnp.float32),
        "pw_mean": 0.1 * jax.random.normal(keys[9], (Cout,), jnp.float32),
        "pw_var": jnp.abs(jax.random.normal(keys[10], (Cout,), jnp.float32)) + 0.5,
    }

    # 1) exact path: f32 I/O + f32 compute + f32 MXU, small row tile so the
    #    interior halos and both image borders are exercised.
    out = jax.block_until_ready(
        flexible_dsconv(x, params, width_mult, io_dtype=jnp.float32,
                        row_tile=4, compute_dtype=jnp.float32,
                        mxu_dtype=jnp.float32, out_dtype=jnp.float32))
    ref = jax.block_until_ready(
        flexible_dsconv_ref(x, params, width_mult,
                            io_dtype=jnp.float32, mxu_dtype=jnp.float32))
    np.testing.assert_allclose(np.asarray(out), np.asarray(ref),
                               rtol=2e-3, atol=2e-3)

    # 2) default deployment path: bf16 HBM I/O, f32 depthwise, bf16 MXU,
    #    auto row tile with the generation-aware VMEM budget.
    out = jax.block_until_ready(flexible_dsconv(x, params, width_mult))
    ref_bf16 = jax.block_until_ready(
        flexible_dsconv_ref(x, params, width_mult,
                            io_dtype=jnp.bfloat16, mxu_dtype=jnp.bfloat16))
    np.testing.assert_allclose(np.asarray(out), np.asarray(ref_bf16),
                               rtol=2e-2, atol=5e-2)

    # 3) v6e/v7x option: depthwise taps in packed bf16 on the VALU.
    out = jax.block_until_ready(
        flexible_dsconv(x, params, width_mult, row_tile=8,
                        compute_dtype=jnp.bfloat16))
    np.testing.assert_allclose(np.asarray(out), np.asarray(ref_bf16),
                               rtol=1e-1, atol=2e-1)

    print("KERNEL_OK")
</pallas_src>

<mosaic_0001>
module attributes {stable_mosaic.version = 11 : i64} {
  func.func @_dsconv_kernel(%arg0: i32, %arg1: i32, %arg2: memref<1x4x16x8xf32, #tpu.memory_space<vmem>>, %arg3: memref<1x1x16x8xf32, #tpu.memory_space<vmem>>, %arg4: memref<1x1x16x8xf32, #tpu.memory_space<vmem>>, %arg5: memref<3x3x1x8xf32, #tpu.memory_space<vmem>>, %arg6: memref<1x8xf32, #tpu.memory_space<vmem>>, %arg7: memref<8x16xf32, #tpu.memory_space<vmem>>, %arg8: memref<1x16xf32, #tpu.memory_space<vmem>>, %arg9: memref<1x64x16xf32, #tpu.memory_space<vmem>>, %arg10: memref<4x16x8xf32, #tpu.memory_space<vmem>>) attributes {dimension_semantics = [#tpu.dimension_semantics<parallel>, #tpu.dimension_semantics<parallel>], iteration_bounds = array<i64: 2, 4>, scalar_prefetch = 0 : i64, scratch_operands = 1 : i64, tpu.core_type = #tpu.core_type<tc>, window_params = [{transform_indices = @transform_0, window_bounds = array<i64: 1, 4, 16, 8>}, {transform_indices = @transform_1, window_bounds = array<i64: 1, 1, 16, 8>}, {transform_indices = @transform_2, window_bounds = array<i64: 1, 1, 16, 8>}, {pipeline_mode = #tpu.pipeline_mode<synchronous>, transform_indices = @transform_3, window_bounds = array<i64: 3, 3, 1, 8>}, {pipeline_mode = #tpu.pipeline_mode<synchronous>, transform_indices = @transform_4, window_bounds = array<i64: 1, 8>}, {pipeline_mode = #tpu.pipeline_mode<synchronous>, transform_indices = @transform_5, window_bounds = array<i64: 8, 16>}, {pipeline_mode = #tpu.pipeline_mode<synchronous>, transform_indices = @transform_6, window_bounds = array<i64: 1, 16>}, {transform_indices = @transform_7, window_bounds = array<i64: 1, 64, 16>}]} {
    %c0 = arith.constant 0 : index
    %c0_0 = arith.constant 0 : index
    %c0_1 = arith.constant 0 : index
    %c0_2 = arith.constant 0 : index
    %0 = vector.load %arg2[%c0, %c0_0, %c0_1, %c0_2] : memref<1x4x16x8xf32, #tpu.memory_space<vmem>>, vector<1x4x16x8xf32>
    %1 = vector.shape_cast %0 : vector<1x4x16x8xf32> to vector<4x16x8xf32>
    %c0_i32 = arith.constant 0 : i32
    %2 = arith.cmpi eq, %arg1, %c0_i32 : i32
    %cst = arith.constant 0.000000e+00 : f32
    %cst_3 = arith.constant 1.000000e+00 : f32
    %3 = arith.select %2, %cst, %cst_3 : f32
    %c3_i32 = arith.constant 3 : i32
    %4 = arith.cmpi eq, %arg1, %c3_i32 : i32
    %cst_4 = arith.constant 0.000000e+00 : f32
    %cst_5 = arith.constant 1.000000e+00 : f32
    %5 = arith.select %4, %cst_4, %cst_5 : f32
    %c0_6 = arith.constant 0 : index
    %c0_7 = arith.constant 0 : index
    %c0_8 = arith.constant 0 : index
    %c0_9 = arith.constant 0 : index
    %6 = vector.load %arg3[%c0_6, %c0_7, %c0_8, %c0_9] : memref<1x1x16x8xf32, #tpu.memory_space<vmem>>, vector<1x1x16x8xf32>
    %7 = vector.shape_cast %6 : vector<1x1x16x8xf32> to vector<1x16x8xf32>
    %8 = vector.broadcast %3 : f32 to vector<1x16x8xf32>
    %9 = arith.mulf %7, %8 : vector<1x16x8xf32>
    %c0_10 = arith.constant 0 : index
    %c0_11 = arith.constant 0 : index
    %c0_12 = arith.constant 0 : index
    %c0_13 = arith.constant 0 : index
    %10 = vector.load %arg4[%c0_10, %c0_11, %c0_12, %c0_13] : memref<1x1x16x8xf32, #tpu.memory_space<vmem>>, vector<1x1x16x8xf32>
    %11 = vector.shape_cast %10 : vector<1x1x16x8xf32> to vector<1x16x8xf32>
    %12 = vector.broadcast %5 : f32 to vector<1x16x8xf32>
    %13 = arith.mulf %11, %12 : vector<1x16x8xf32>
    %c0_14 = arith.constant 0 : index
    %c0_15 = arith.constant 0 : index
    %c0_16 = arith.constant 0 : index
    %c0_17 = arith.constant 0 : index
    %14 = vector.load %arg5[%c0_14, %c0_15, %c0_16, %c0_17] : memref<3x3x1x8xf32, #tpu.memory_space<vmem>>, vector<3x3x1x8xf32>
    %cst_18 = arith.constant 0.000000e+00 : f32
    %15 = vector.broadcast %cst_18 : f32 to vector<4x1x8xf32>
    %16 = vector.extract_strided_slice %1 {offsets = [0, 0, 0], sizes = [4, 15, 8], strides = [1, 1, 1]} : vector<4x16x8xf32> to vector<4x15x8xf32>
    %17 = tpu.concatenate %15, %16 in 1 : vector<4x1x8xf32>, vector<4x15x8xf32> -> vector<4x16x8xf32>
    %18 = vector.extract_strided_slice %1 {offsets = [0, 1, 0], sizes = [4, 15, 8], strides = [1, 1, 1]} : vector<4x16x8xf32> to vector<4x15x8xf32>
    %19 = tpu.concatenate %18, %15 in 1 : vector<4x15x8xf32>, vector<4x1x8xf32> -> vector<4x16x8xf32>
    %cst_19 = arith.constant 0.000000e+00 : f32
    %20 = vector.broadcast %cst_19 : f32 to vector<1x1x8xf32>
    %21 = vector.extract_strided_slice %9 {offsets = [0, 0, 0], sizes = [1, 15, 8], strides = [1, 1, 1]} : vector<1x16x8xf32> to vector<1x15x8xf32>
    %22 = tpu.concatenate %20, %21 in 1 : vector<1x1x8xf32>, vector<1x15x8xf32> -> vector<1x16x8xf32>
    %23 = vector.extract_strided_slice %9 {offsets = [0, 1, 0], sizes = [1, 15, 8], strides = [1, 1, 1]} : vector<1x16x8xf32> to vector<1x15x8xf32>
    %24 = tpu.concatenate %23, %20 in 1 : vector<1x15x8xf32>, vector<1x1x8xf32> -> vector<1x16x8xf32>
    %cst_20 = arith.constant 0.000000e+00 : f32
    %25 = vector.broadcast %cst_20 : f32 to vector<1x1x8xf32>
    %26 = vector.extract_strided_slice %13 {offsets = [0, 0, 0], sizes = [1, 15, 8], strides = [1, 1, 1]} : vector<1x16x8xf32> to vector<1x15x8xf32>
    %27 = tpu.concatenate %25, %26 in 1 : vector<1x1x8xf32>, vector<1x15x8xf32> -> vector<1x16x8xf32>
    %28 = vector.extract_strided_slice %13 {offsets = [0, 1, 0], sizes = [1, 15, 8], strides = [1, 1, 1]} : vector<1x16x8xf32> to vector<1x15x8xf32>
    %29 = tpu.concatenate %28, %25 in 1 : vector<1x15x8xf32>, vector<1x1x8xf32> -> vector<1x16x8xf32>
    %30 = vector.extract_strided_slice %14 {offsets = [1, 0, 0, 0], sizes = [1, 1, 1, 8], strides = [1, 1, 1, 1]} : vector<3x3x1x8xf32> to vector<1x1x1x8xf32>
    %31 = vector.shape_cast %30 : vector<1x1x1x8xf32> to vector<1x8xf32>
    %32 = vector.shape_cast %31 : vector<1x8xf32> to vector<1x1x8xf32>
    %33 = vector.broadcast %32 : vector<1x1x8xf32> to vector<4x16x8xf32>
    %34 = arith.mulf %17, %33 : vector<4x16x8xf32>
    %35 = vector.extract_strided_slice %14 {offsets = [1, 1, 0, 0], sizes = [1, 1, 1, 8], strides = [1, 1, 1, 1]} : vector<3x3x1x8xf32> to vector<1x1x1x8xf32>
    %36 = vector.shape_cast %35 : vector<1x1x1x8xf32> to vector<1x8xf32>
    %37 = vector.shape_cast %36 : vector<1x8xf32> to vector<1x1x8xf32>
    %38 = vector.broadcast %37 : vector<1x1x8xf32> to vector<4x16x8xf32>
    %39 = arith.mulf %1, %38 : vector<4x16x8xf32>
    %40 = arith.addf %34, %39 : vector<4x16x8xf32>
    %41 = vector.extract_strided_slice %14 {offsets = [1, 2, 0, 0], sizes = [1, 1, 1, 8], strides = [1, 1, 1, 1]} : vector<3x3x1x8xf32> to vector<1x1x1x8xf32>
    %42 = vector.shape_cast %41 : vector<1x1x1x8xf32> to vector<1x8xf32>
    %43 = vector.shape_cast %42 : vector<1x8xf32> to vector<1x1x8xf32>
    %44 = vector.broadcast %43 : vector<1x1x8xf32> to vector<4x16x8xf32>
    %45 = arith.mulf %19, %44 : vector<4x16x8xf32>
    %46 = arith.addf %40, %45 : vector<4x16x8xf32>
    %47 = vector.extract_strided_slice %14 {offsets = [0, 0, 0, 0], sizes = [1, 1, 1, 8], strides = [1, 1, 1, 1]} : vector<3x3x1x8xf32> to vector<1x1x1x8xf32>
    %48 = vector.shape_cast %47 : vector<1x1x1x8xf32> to vector<1x8xf32>
    %49 = vector.shape_cast %48 : vector<1x8xf32> to vector<1x1x8xf32>
    %50 = vector.broadcast %49 : vector<1x1x8xf32> to vector<4x16x8xf32>
    %51 = arith.mulf %17, %50 : vector<4x16x8xf32>
    %52 = vector.extract_strided_slice %14 {offsets = [0, 1, 0, 0], sizes = [1, 1, 1, 8], strides = [1, 1, 1, 1]} : vector<3x3x1x8xf32> to vector<1x1x1x8xf32>
    %53 = vector.shape_cast %52 : vector<1x1x1x8xf32> to vector<1x8xf32>
    %54 = vector.shape_cast %53 : vector<1x8xf32> to vector<1x1x8xf32>
    %55 = vector.broadcast %54 : vector<1x1x8xf32> to vector<4x16x8xf32>
    %56 = arith.mulf %1, %55 : vector<4x16x8xf32>
    %57 = arith.addf %51, %56 : vector<4x16x8xf32>
    %58 = vector.extract_strided_slice %14 {offsets = [0, 2, 0, 0], sizes = [1, 1, 1, 8], strides = [1, 1, 1, 1]} : vector<3x3x1x8xf32> to vector<1x1x1x8xf32>
    %59 = vector.shape_cast %58 : vector<1x1x1x8xf32> to vector<1x8xf32>
    %60 = vector.shape_cast %59 : vector<1x8xf32> to vector<1x1x8xf32>
    %61 = vector.broadcast %60 : vector<1x1x8xf32> to vector<4x16x8xf32>
    %62 = arith.mulf %19, %61 : vector<4x16x8xf32>
    %63 = arith.addf %57, %62 : vector<4x16x8xf32>
    %64 = vector.extract_strided_slice %14 {offsets = [2, 0, 0, 0], sizes = [1, 1, 1, 8], strides = [1, 1, 1, 1]} : vector<3x3x1x8xf32> to vector<1x1x1x8xf32>
    %65 = vector.shape_cast %64 : vector<1x1x1x8xf32> to vector<1x8xf32>
    %66 = vector.shape_cast %65 : vector<1x8xf32> to vector<1x1x8xf32>
    %67 = vector.broadcast %66 : vector<1x1x8xf32> to vector<4x16x8xf32>
    %68 = arith.mulf %17, %67 : vector<4x16x8xf32>
    %69 = vector.extract_strided_slice %14 {offsets = [2, 1, 0, 0], sizes = [1, 1, 1, 8], strides = [1, 1, 1, 1]} : vector<3x3x1x8xf32> to vector<1x1x1x8xf32>
    %70 = vector.shape_cast %69 : vector<1x1x1x8xf32> to vector<1x8xf32>
    %71 = vector.shape_cast %70 : vector<1x8xf32> to vector<1x1x8xf32>
    %72 = vector.broadcast %71 : vector<1x1x8xf32> to vector<4x16x8xf32>
    %73 = arith.mulf %1, %72 : vector<4x16x8xf32>
    %74 = arith.addf %68, %73 : vector<4x16x8xf32>
    %75 = vector.extract_strided_slice %14 {offsets = [2, 2, 0, 0], sizes = [1, 1, 1, 8], strides = [1, 1, 1, 1]} : vector<3x3x1x8xf32> to vector<1x1x1x8xf32>
    %76 = vector.shape_cast %75 : vector<1x1x1x8xf32> to vector<1x8xf32>
    %77 = vector.shape_cast %76 : vector<1x8xf32> to vector<1x1x8xf32>
    %78 = vector.broadcast %77 : vector<1x1x8xf32> to vector<4x16x8xf32>
    %79 = arith.mulf %19, %78 : vector<4x16x8xf32>
    %80 = arith.addf %74, %79 : vector<4x16x8xf32>
    %81 = vector.extract_strided_slice %14 {offsets = [0, 0, 0, 0], sizes = [1, 1, 1, 8], strides = [1, 1, 1, 1]} : vector<3x3x1x8xf32> to vector<1x1x1x8xf32>
    %82 = vector.shape_cast %81 : vector<1x1x1x8xf32> to vector<1x8xf32>
    %83 = vector.shape_cast %82 : vector<1x8xf32> to vector<1x1x8xf32>
    %84 = vector.broadcast %83 : vector<1x1x8xf32> to vector<1x16x8xf32>
    %85 = arith.mulf %22, %84 : vector<1x16x8xf32>
    %86 = vector.extract_strided_slice %14 {offsets = [0, 1, 0, 0], sizes = [1, 1, 1, 8], strides = [1, 1, 1, 1]} : vector<3x3x1x8xf32> to vector<1x1x1x8xf32>
    %87 = vector.shape_cast %86 : vector<1x1x1x8xf32> to vector<1x8xf32>
    %88 = vector.shape_cast %87 : vector<1x8xf32> to vector<1x1x8xf32>
    %89 = vector.broadcast %88 : vector<1x1x8xf32> to vector<1x16x8xf32>
    %90 = arith.mulf %9, %89 : vector<1x16x8xf32>
    %91 = arith.addf %85, %90 : vector<1x16x8xf32>
    %92 = vector.extract_strided_slice %14 {offsets = [0, 2, 0, 0], sizes = [1, 1, 1, 8], strides = [1, 1, 1, 1]} : vector<3x3x1x8xf32> to vector<1x1x1x8xf32>
    %93 = vector.shape_cast %92 : vector<1x1x1x8xf32> to vector<1x8xf32>
    %94 = vector.shape_cast %93 : vector<1x8xf32> to vector<1x1x8xf32>
    %95 = vector.broadcast %94 : vector<1x1x8xf32> to vector<1x16x8xf32>
    %96 = arith.mulf %24, %95 : vector<1x16x8xf32>
    %97 = arith.addf %91, %96 : vector<1x16x8xf32>
    %98 = vector.extract_strided_slice %14 {offsets = [2, 0, 0, 0], sizes = [1, 1, 1, 8], strides = [1, 1, 1, 1]} : vector<3x3x1x8xf32> to vector<1x1x1x8xf32>
    %99 = vector.shape_cast %98 : vector<1x1x1x8xf32> to vector<1x8xf32>
    %100 = vector.shape_cast %99 : vector<1x8xf32> to vector<1x1x8xf32>
    %101 = vector.broadcast %100 : vector<1x1x8xf32> to vector<1x16x8xf32>
    %102 = arith.mulf %27, %101 : vector<1x16x8xf32>
    %103 = vector.extract_strided_slice %14 {offsets = [2, 1, 0, 0], sizes = [1, 1, 1, 8], strides = [1, 1, 1, 1]} : vector<3x3x1x8xf32> to vector<1x1x1x8xf32>
    %104 = vector.shape_cast %103 : vector<1x1x1x8xf32> to vector<1x8xf32>
    %105 = vector.shape_cast %104 : vector<1x8xf32> to vector<1x1x8xf32>
    %106 = vector.broadcast %105 : vector<1x1x8xf32> to vector<1x16x8xf32>
    %107 = arith.mulf %13, %106 : vector<1x16x8xf32>
    %108 = arith.addf %102, %107 : vector<1x16x8xf32>
    %109 = vector.extract_strided_slice %14 {offsets = [2, 2, 0, 0], sizes = [1, 1, 1, 8], strides = [1, 1, 1, 1]} : vector<3x3x1x8xf32> to vector<1x1x1x8xf32>
    %110 = vector.shape_cast %109 : vector<1x1x1x8xf32> to vector<1x8xf32>
    %111 = vector.shape_cast %110 : vector<1x8xf32> to vector<1x1x8xf32>
    %112 = vector.broadcast %111 : vector<1x1x8xf32> to vector<1x16x8xf32>
    %113 = arith.mulf %29, %112 : vector<1x16x8xf32>
    %114 = arith.addf %108, %113 : vector<1x16x8xf32>
    %115 = vector.extract_strided_slice %46 {offsets = [0, 0, 0], sizes = [1, 16, 8], strides = [1, 1, 1]} : vector<4x16x8xf32> to vector<1x16x8xf32>
    %116 = vector.extract_strided_slice %80 {offsets = [1, 0, 0], sizes = [1, 16, 8], strides = [1, 1, 1]} : vector<4x16x8xf32> to vector<1x16x8xf32>
    %117 = arith.addf %115, %116 : vector<1x16x8xf32>
    %118 = arith.addf %117, %97 : vector<1x16x8xf32>
    %c0_21 = arith.constant 0 : index
    %c0_22 = arith.constant 0 : index
    %c0_23 = arith.constant 0 : index
    %119 = vector.load %arg10[%c0_21, %c0_22, %c0_23] : memref<4x16x8xf32, #tpu.memory_space<vmem>>, vector<1x16x8xf32>
    tpu.vector_store %arg10[%c0_21, %c0_22, %c0_23], %118 {strides = array<i32>} : memref<4x16x8xf32, #tpu.memory_space<vmem>>, vector<1x16x8xf32>,
    %120 = vector.extract_strided_slice %46 {offsets = [3, 0, 0], sizes = [1, 16, 8], strides = [1, 1, 1]} : vector<4x16x8xf32> to vector<1x16x8xf32>
    %121 = vector.extract_strided_slice %63 {offsets = [2, 0, 0], sizes = [1, 16, 8], strides = [1, 1, 1]} : vector<4x16x8xf32> to vector<1x16x8xf32>
    %122 = arith.addf %120, %121 : vector<1x16x8xf32>
    %123 = arith.addf %122, %114 : vector<1x16x8xf32>
    %c3 = arith.constant 3 : index
    %c0_24 = arith.constant 0 : index
    %c0_25 = arith.constant 0 : index
    %124 = vector.load %arg10[%c3, %c0_24, %c0_25] : memref<4x16x8xf32, #tpu.memory_space<vmem>>, vector<1x16x8xf32>
    tpu.vector_store %arg10[%c3, %c0_24, %c0_25], %123 {strides = array<i32>} : memref<4x16x8xf32, #tpu.memory_space<vmem>>, vector<1x16x8xf32>,
    %125 = vector.extract_strided_slice %46 {offsets = [1, 0, 0], sizes = [2, 16, 8], strides = [1, 1, 1]} : vector<4x16x8xf32> to vector<2x16x8xf32>
    %126 = vector.extract_strided_slice %63 {offsets = [0, 0, 0], sizes = [2, 16, 8], strides = [1, 1, 1]} : vector<4x16x8xf32> to vector<2x16x8xf32>
    %127 = arith.addf %125, %126 : vector<2x16x8xf32>
    %128 = vector.extract_strided_slice %80 {offsets = [2, 0, 0], sizes = [2, 16, 8], strides = [1, 1, 1]} : vector<4x16x8xf32> to vector<2x16x8xf32>
    %129 = arith.addf %127, %128 : vector<2x16x8xf32>
    %c1 = arith.constant 1 : index
    %c0_26 = arith.constant 0 : index
    %c0_27 = arith.constant 0 : index
    %130 = vector.load %arg10[%c1, %c0_26, %c0_27] : memref<4x16x8xf32, #tpu.memory_space<vmem>>, vector<2x16x8xf32>
    tpu.vector_store %arg10[%c1, %c0_26, %c0_27], %129 {strides = array<i32>} : memref<4x16x8xf32, #tpu.memory_space<vmem>>, vector<2x16x8xf32>,
    %c0_28 = arith.constant 0 : index
    %c0_29 = arith.constant 0 : index
    %c0_30 = arith.constant 0 : index
    %131 = vector.load %arg10[%c0_28, %c0_29, %c0_30] : memref<4x16x8xf32, #tpu.memory_space<vmem>>, vector<4x16x8xf32>
    %c0_31 = arith.constant 0 : index
    %c0_32 = arith.constant 0 : index
    %132 = vector.load %arg6[%c0_31, %c0_32] : memref<1x8xf32, #tpu.memory_space<vmem>>, vector<1x8xf32>
    %133 = vector.shape_cast %132 : vector<1x8xf32> to vector<1x1x8xf32>
    %134 = vector.broadcast %133 : vector<1x1x8xf32> to vector<4x16x8xf32>
    %135 = arith.addf %131, %134 : vector<4x16x8xf32>
    %cst_33 = arith.constant 0.000000e+00 : f32
    %cst_34 = arith.constant 6.000000e+00 : f32
    %136 = vector.broadcast %cst_33 : f32 to vector<4x16x8xf32>
    %137 = arith.maximumf %136, %135 : vector<4x16x8xf32>
    %138 = vector.broadcast %cst_34 : f32 to vector<4x16x8xf32>
    %139 = arith.minimumf %138, %137 : vector<4x16x8xf32>
    %140 = vector.shape_cast %139 : vector<4x16x8xf32> to vector<64x8xf32>
    %c0_35 = arith.constant 0 : index
    %c0_36 = arith.constant 0 : index
    %141 = vector.load %arg7[%c0_35, %c0_36] : memref<8x16xf32, #tpu.memory_space<vmem>>, vector<8x16xf32>
    %cst_37 = arith.constant dense<0.000000e+00> : vector<64x16xf32>
    %142 = tpu.matmul %140, %141, %cst_37 {dimension_numbers = #tpu.dot_dimension_numbers<[1], [0], [0], [1], [0, 0, 1, 1], [], []>} : vector<64x8xf32>, vector<8x16xf32>, vector<64x16xf32> -> vector<64x16xf32>
    %c0_38 = arith.constant 0 : index
    %c0_39 = arith.constant 0 : index
    %143 = vector.load %arg8[%c0_38, %c0_39] : memref<1x16xf32, #tpu.memory_space<vmem>>, vector<1x16xf32>
    %144 = vector.broadcast %143 : vector<1x16xf32> to vector<64x16xf32>
    %145 = arith.addf %142, %144 : vector<64x16xf32>
    %c0_40 = arith.constant 0 : index
    %c0_41 = arith.constant 0 : index
    %c0_42 = arith.constant 0 : index
    %146 = vector.load %arg9[%c0_40, %c0_41, %c0_42] : memref<1x64x16xf32, #tpu.memory_space<vmem>>, vector<1x64x16xf32>
    %147 = vector.shape_cast %146 : vector<1x64x16xf32> to vector<64x16xf32>
    %148 = vector.shape_cast %145 : vector<64x16xf32> to vector<1x64x16xf32>
    tpu.vector_store %arg9[%c0_40, %c0_41, %c0_42], %148 {strides = array<i32>} : memref<1x64x16xf32, #tpu.memory_space<vmem>>, vector<1x64x16xf32>,
    return
  }
  func.func @transform_0(%arg0: i32, %arg1: i32) -> (i32, i32, i32, i32) {
    %c0_i32 = arith.constant 0 : i32
    %c0_i32_0 = arith.constant 0 : i32
    %c0_i32_1 = arith.constant 0 : i32
    return %arg0, %arg1, %c0_i32, %c0_i32_0 : i32, i32, i32, i32
  }
  func.func @transform_1(%arg0: i32, %arg1: i32) -> (i32, i32, i32, i32) {
    %c4_i32 = arith.constant 4 : i32
    %0 = arith.muli %arg1, %c4_i32 : i32
    %c1_i32 = arith.constant 1 : i32
    %1 = arith.subi %0, %c1_i32 : i32
    %c0_i32 = arith.constant 0 : i32
    %2 = arith.maxsi %1, %c0_i32 : i32
    %c0_i32_0 = arith.constant 0 : i32
    %c0_i32_1 = arith.constant 0 : i32
    %c0_i32_2 = arith.constant 0 : i32
    return %arg0, %2, %c0_i32_0, %c0_i32_1 : i32, i32, i32, i32
  }
  func.func @transform_2(%arg0: i32, %arg1: i32) -> (i32, i32, i32, i32) {
    %c1_i32 = arith.constant 1 : i32
    %0 = arith.addi %arg1, %c1_i32 : i32
    %c4_i32 = arith.constant 4 : i32
    %1 = arith.muli %0, %c4_i32 : i32
    %c15_i32 = arith.constant 15 : i32
    %2 = arith.minsi %1, %c15_i32 : i32
    %c0_i32 = arith.constant 0 : i32
    %c0_i32_0 = arith.constant 0 : i32
    %c0_i32_1 = arith.constant 0 : i32
    return %arg0, %2, %c0_i32, %c0_i32_0 : i32, i32, i32, i32
  }
  func.func @transform_3(%arg0: i32, %arg1: i32) -> (i32, i32, i32, i32) {
    %c0_i32 = arith.constant 0 : i32
    %c0_i32_0 = arith.constant 0 : i32
    %c0_i32_1 = arith.constant 0 : i32
    %c0_i32_2 = arith.constant 0 : i32
    %c0_i32_3 = arith.constant 0 : i32
    return %c0_i32, %c0_i32_0, %c0_i32_1, %c0_i32_2 : i32, i32, i32, i32
  }
  func.func @transform_4(%arg0: i32, %arg1: i32) -> (i32, i32) {
    %c0_i32 = arith.constant 0 : i32
    %c0_i32_0 = arith.constant 0 : i32
    %c0_i32_1 = arith.constant 0 : i32
    return %c0_i32, %c0_i32_0 : i32, i32
  }
  func.func @transform_5(%arg0: i32, %arg1: i32) -> (i32, i32) {
    %c0_i32 = arith.constant 0 : i32
    %c0_i32_0 = arith.constant 0 : i32
    %c0_i32_1 = arith.constant 0 : i32
    return %c0_i32, %c0_i32_0 : i32, i32
  }
  func.func @transform_6(%arg0: i32, %arg1: i32) -> (i32, i32) {
    %c0_i32 = arith.constant 0 : i32
    %c0_i32_0 = arith.constant 0 : i32
    %c0_i32_1 = arith.constant 0 : i32
    return %c0_i32, %c0_i32_0 : i32, i32
  }
  func.func @transform_7(%arg0: i32, %arg1: i32) -> (i32, i32, i32) {
    %c0_i32 = arith.constant 0 : i32
    %c0_i32_0 = arith.constant 0 : i32
    return %arg0, %arg1, %c0_i32 : i32, i32, i32
  }
}

</mosaic_0001>

<bundles_post_ra>
// kernel: tpu_custom_call.1
= control target key start
LH: loop header
LB: loop body
LE: loop exit
PB: predicated region body
PF: predicated region fallthrough
CT: control target
= control target key end

     0   :  { %s1173_s24 = smov 0   ;;  %s1175_s25 = smov 0   ;;  %s1627_s0 = inlined_call_operand.vmem [shape: f32[2,16,16,8], index: 0, kind: input, shape index: {}]   ;;  %s1628_s1 = inlined_call_operand.vmem [shape: f32[2,16,16,8], index: 1, kind: input, shape index: {}]   ;;  %s1629_s2 = inlined_call_operand.vmem [shape: f32[2,16,16,8], index: 2, kind: input, shape index: {}]   ;;  %s1630_s3 = inlined_call_operand.vmem [shape: f32[3,3,1,8], index: 3, kind: input, shape index: {}]   ;;  %s1631_s4 = inlined_call_operand.vmem [shape: f32[1,8], index: 4, kind: input, shape index: {}]   ;;  %s1632_s5 = inlined_call_operand.vmem [shape: f32[8,16], index: 5, kind: input, shape index: {}]   ;;  %s1633_s6 = inlined_call_operand.vmem [shape: f32[1,16], index: 6, kind: input, shape index: {}]   ;;  %s1634_s7 = inlined_call_operand.vmem [shape: f32[2,256,16], index: 7, kind: output, shape index: {}]  }
   0x1   :  { %s1177_s26 = smov 0   ;;  %s1179_s27 = smov 0  }
   0x2   :  { %s1181_s28 = smov 0  }
   0x3 LB: > { %s26_s29 = sadd.s32 1, %s1123_s26  ;;  %s29_s30 = sadd.s32 1, %s1127_s27  ;;  %s1131_s28 = sphi %s1181_s28, %s17_s28   ;;  %s1127_s27 = sphi %s1179_s27, %s1639_s27   ;;  %s1123_s26 = sphi %s1177_s26, %s1638_s26   ;;  %s1119_s25 = sphi %s1175_s25, %s1637_s25   ;;  %s1115_s24 = sphi %s1173_s24, %s1636_s24  }
   0x4   : > { %p27_p0 = scmp.ge.s32.totalorder %s26_s29, 4  ;;  %p996_p1 = scmp.ge.s32.totalorder %s1131_s28, 1 }
   0x5   : > { %p323_p2 = scmp.lt.s32.totalorder %s1131_s28, 9 }
   0x6   : > { %s1641_s29 = smov (%p27_p0, %s26_s29), 0  ;;  %s1643_s30 = smov (!%p27_p0, %s29_s30), %s1127_s27 }
   0x7   : > { %p324_p3 = pnand %p996_p1, %p323_p2  ;;  %p31_p4 = scmp.ge.s32.totalorder %s1643_s30, 2 }
   0x8   : > { %s1209_s10 = sshll.u32 (!%p324_p3), %s1115_s24, 2  ;;  %p391_p5 = scmp.lt.s32.totalorder (!%p324_p3), %s1119_s25, 1 }
   0x9   : > { %s1645_s30 = smov (%p31_p4, %s1643_s30), 0  ;;  %327 = sbr.rel (%p324_p3) target bundleno = 221 (0xdd), region = 48 }
   0xa   : > { %p393_p6 = scmp.lt.s32.totalorder (!%p324_p3), %s1209_s10, 15  ;;  %s1038_s13 = sadd.s32 (!%p324_p3), 4, %s1209_s10 }
   0xb   : > { %p1216_p7 = scmp.lt.s32.totalorder (!%p324_p3), %s1038_s13, 15  ;;  %p455_p8 = scmp.eq.s32.totalorder (!%p324_p3), %s1115_s24, 3 }
   0xc   : > { %p453_p11 = scmp.eq.s32.totalorder (!%p324_p3), %s1115_s24, 0 }
   0xe   : > { %v772_v0 = vld [vmem:[%s1632_s5] sm:$0xff]  ;;  %s1647_s25 = smov (!%p391_p5, %s1119_s25), 1  ;;  %vm484_vm0 = vcmask 1040384   ;;  %vm509_vm1 = vcmask 1046528   ;;  %s1649_s13 = smov (!%p1216_p7, %s1038_s13), 15  ;;  %vm713_vm2 = vcmask 64512  }
   0xf   : > { %1040 = vmatpush.msra.mxu2 %v772_v0  ;;  %1041 = vmatpush.msra.mxu3 %v772_v0  ;;  %s394_s11 = scalar_select %p393_p6, %s1209_s10, 15  ;;  %v1224_v1 = vld [vmem:[%s1630_s3 + $0x4] ss:$0 sm:$0xff]  ;;  %v1229_v2 = vld [vmem:[%s1630_s3 + $0x3] ss:$0 sm:$0xff]  ;;  %vm842_vm3 = vcmask 130048  }
  0x10   : > { %816 = vmatpush.msra.mxu0 %v772_v0  ;;  %1039 = vmatpush.msra.mxu1 %v772_v0  ;;  %s1213_s12 = sshll.u32 %s1647_s25, 5  ;;  %v1239_v3 = vld [vmem:[%s1630_s3 + $0x5] ss:$0 sm:$0xff]  ;;  %v1244_v4 = vld [vmem:[%s1630_s3] ss:$0 sm:$0xff]  ;;  %s1651_s13 = smov (!%p1216_p7, %s1649_s13), 15 }
  0x11   : > { %s998_s14 = sshll.u32 %s394_s11, 1  ;;  %v1249_v5 = vld [vmem:[%s1630_s3 + $0x1] ss:$0 sm:$0xff]  ;;  %v1264_v9 = vld [vmem:[%s1630_s3 + $0x2] ss:$0 sm:$0xff]  ;;  %s1015_s11 = sshll.u32 %s1651_s13, 1 }
  0x12   : > { %s397_s16 = sadd.s32 %s1213_s12, %s998_s14  ;;  %v1269_v10 = vld [vmem:[%s1630_s3 + $0x6] ss:$0 sm:$0xff]  ;;  %v1274_v11 = vld [vmem:[%s1630_s3 + $0x7] ss:$0 sm:$0xff]  ;;  %v1299_v23 = vld [vmem:[%s1630_s3 + $0x8] ss:$0 sm:$0xff] }
  0x13   : > { %s1000_s19 = sshll.u32 %s397_s16, 3  ;;  %s1344_s14 = sadd.s32 4294967295, %s1209_s10 }
  0x14   : > { %s1234_s25 = scalar_lea.vmem %s1627_s0, %s1000_s19  ;;  %s428_s16 = sadd.s32 %s1015_s11, %s1213_s12 }
  0x15   : > { %v1253_v6 = vld [vmem:[%s1234_s25 + $0x10] sm:$0xff]  ;;  %v1256_v7 = vld [vmem:[%s1234_s25 + $0x18] sm:$0xff]  ;;  %v1259_v8 = vld [vmem:[%s1234_s25 + $0x20] sm:$0xff]  ;;  %s1332_s15 = scalar_select %p455_p8, 0.0, 1.0 }
  0x16   : > { %v1279_v12 = vld [vmem:[%s1234_s25 + $0x28] sm:$0xff]  ;;  %v1282_v13 = vld [vmem:[%s1234_s25 + $0x30] sm:$0xff]  ;;  %v1285_v14 = vld [vmem:[%s1234_s25 + $0x38] sm:$0xff]  ;;  %v488_v15 = vrot.slane %v1253_v6, 7  ;;  %v491_v16 = vrot.slane %v1259_v8, 7  ;;  %v513_v17 = vrot.slane %v1253_v6, 1  ;;  %v580_v18 = vmul.f32 %v1224_v1, %v1259_v8 }
  0x17   : > { %v494_v19 = vrot.slane %v1282_v13, 7  ;;  %v514_v20 = vrot.slane %v1256_v7, 1  ;;  %v516_v21 = vrot.slane %v1259_v8, 1  ;;  %v517_v22 = vrot.slane %v1279_v12, 1  ;;  %p403_p9 = scmp.gt.s32.totalorder %s1344_s14, 0  ;;  %s1017_s10 = sshll.u32 %s428_s16, 3 }
  0x18   : > { %v1304_v24 = vsel %vm484_vm0, 0.0, %v488_v15  ;;  %v1309_v25 = vsel %vm484_vm0, 0.0, %v491_v16  ;;  %v519_v26 = vrot.slane %v1282_v13, 1  ;;  %v520_v27 = vrot.slane %v1285_v14, 1  ;;  %p1003_p10 = scmp.lt.s32.totalorder %s1344_s14, 15  ;;  %s430_s18 = scalar_lea.vmem %s1629_s2, %s1017_s10  ;;  %v1364_v48 = vld [vmem:[%s1234_s25] sm:$0xff] }
  0x19   : > { %v508_v28 = vsel %vm484_vm0, 0.0, %v494_v19  ;;  %v1321_v29 = vsel %vm509_vm1, %v513_v17, %v514_v20  ;;  %v1326_v30 = vsel %vm509_vm1, %v516_v21, %v517_v22  ;;  %v569_v31 = vmul.f32 %v1229_v2, %v1309_v25  ;;  %v462_v50 = vld [vmem:[%s430_s18] sm:$0xff]  ;;  %v463_v51 = vld [vmem:[%s430_s18 + $0x8] sm:$0xff]  ;;  %s404_s19 = scalar_select %p403_p9, %s1344_s14, 0 }
  0x1a   : > { %v521_v32 = vsel %vm509_vm1, %v519_v26, %v520_v27  ;;  %v599_v33 = vmul.f32 %v1239_v3, %v1326_v30  ;;  %v616_v34 = vmul.f32 %v1244_v4, %v1304_v24  ;;  %v625_v35 = vmul.f32 %v1249_v5, %v1253_v6  ;;  %s1380_s20 = scalar_select %p453_p11, 0.0, 1.0  ;;  %v1385_v61 = vld [vmem:[%s1234_s25 + $0x8] sm:$0xff] }
  0x1b   : > { %v588_v36 = vadd.f32 %v580_v18, %v569_v31  ;;  %v640_v37 = vmul.f32 %v1264_v9, %v1321_v29  ;;  %v657_v38 = vmul.f32 %v1269_v10, %v508_v28  ;;  %v666_v39 = vmul.f32 %v1274_v11, %v1282_v13  ;;  %s1653_s19 = smov (!%p1003_p10, %s404_s19), 15  ;;  %s1018_s14 = sshll.u32 %s1115_s24, 3 }
  0x1c   : > { %v631_v40 = vadd.f32 %v625_v35, %v616_v34  ;;  %v681_v41 = vmul.f32 %v1299_v23, %v521_v32  ;;  %v464_v42 = vstv %s1332_s15  ;;  %v571_v43 = vmul.f32 %v1229_v2, %v508_v28  ;;  %s1008_s21 = sshll.u32 %s1653_s19, 1  ;;  %p438_p12 = scmp.lt.s32.totalorder %s1018_s14, 31 }
  0x1d   : > { %v607_v44 = vadd.f32 %v599_v33, %v588_v36  ;;  %v672_v45 = vadd.f32 %v666_v39, %v657_v38  ;;  %v582_v46 = vmul.f32 %v1224_v1, %v1282_v13  ;;  %v601_v47 = vmul.f32 %v1239_v3, %v521_v32  ;;  %s411_s25 = sadd.s32 %s1008_s21, %s1213_s12 }
  0x1e   : > { %v646_v49 = vadd.f32 %v640_v37, %v631_v40  ;;  %v618_v52 = vmul.f32 %v1244_v4, %v1309_v25  ;;  %v627_v53 = vmul.f32 %v1249_v5, %v1259_v8  ;;  %v642_v54 = vmul.f32 %v1264_v9, %v1326_v30  ;;  %s1010_s22 = sshll.u32 %s411_s25, 3  ;;  %s1655_s14 = smov (!%p438_p12, %s1018_s14), 31 }
  0x1f   : > { %v687_v55 = vadd.f32 %v681_v41, %v672_v45  ;;  %v1376_v56 = vmul.f32 %v464_v42, %v462_v50  ;;  %v1378_v57 = vmul.f32 %v464_v42, %v463_v51  ;;  %v590_v58 = vadd.f32 %v582_v46, %v571_v43  ;;  %s413_s9 = scalar_lea.vmem %s1628_s1, %s1010_s22  ;;  %s441_s16 = sadd.s32 %s1213_s12, %s1655_s14 }
  0x20   : > { %v725_v59 = vadd.f32 %v646_v49, %v607_v44  ;;  %v633_v60 = vadd.f32 %v627_v53, %v618_v52  ;;  %v485_v62 = vrot.slane %v1364_v48, 7  ;;  %v510_v63 = vrot.slane %v1364_v48, 1  ;;  %v457_v46 = vld [vmem:[%s413_s9] sm:$0xff]  ;;  %s1020_s10 = sshll.u32 %s441_s16, 3 }
  0x21   : > { %v550_v0 = vrot.slane %v1376_v56, 7  ;;  %v556_v17 = vrot.slane %v1376_v56, 1  ;;  %v557_v18 = vrot.slane %v1378_v57, 1  ;;  %v609_v21 = vadd.f32 %v601_v47, %v590_v58  ;;  %v458_v47 = vld [vmem:[%s413_s9 + $0x8] sm:$0xff]  ;;  %v1434_v58 = vld [vmem:[%s1631_s4] ss:$0 sm:$0xff] }
  0x22   : > { %v729_v26 = vadd.f32 %v725_v59, %v687_v55  ;;  %v648_v28 = vadd.f32 %v642_v54, %v633_v60  ;;  %v701_v31 = vmul.f32 %v1274_v11, %v1376_v56  ;;  %v459_v32 = vstv %s1380_s20  ;;  %s443_s20 = scalar_lea.vmem %s1634_s7, %s1020_s10 }
  0x23   : > { %v555_v33 = vsel %vm484_vm0, 0.0, %v550_v0  ;;  %v558_v34 = vsel %vm509_vm1, %v556_v17, %v557_v18  ;;  %v505_v35 = vsel %vm484_vm0, 0.0, %v485_v62  ;;  %v511_v36 = vrot.slane %v1385_v61, 1 }
  0x24   : > { %734 = vst.msk [vmem:[#allocation2 + $0x20] sm:$0xff] %vm713_vm2, %v729_v26  ;;  %v699_v37 = vmul.f32 %v1269_v10, %v555_v33  ;;  %v705_v38 = vmul.f32 %v1299_v23, %v558_v34  ;;  %v716_v39 = vadd.f32 %v648_v28, %v609_v21  ;;  %v565_v40 = vmul.f32 %v1229_v2, %v505_v35 }
  0x25   : > { %v512_v41 = vsel %vm509_vm1, %v510_v63, %v511_v36  ;;  %v576_v42 = vmul.f32 %v1224_v1, %v1364_v48  ;;  %v653_v43 = vmul.f32 %v1269_v10, %v1304_v24  ;;  %v662_v44 = vmul.f32 %v1274_v11, %v1253_v6 }
  0x26   : > { %v703_v45 = vadd.f32 %v701_v31, %v699_v37  ;;  %v595_v49 = vmul.f32 %v1239_v3, %v512_v41  ;;  %v677_v50 = vmul.f32 %v1299_v23, %v1321_v29  ;;  %v567_v51 = vmul.f32 %v1229_v2, %v1304_v24 }
  0x27   : > { %v1427_v52 = vmul.f32 %v459_v32, %v457_v46  ;;  %v1429_v53 = vmul.f32 %v459_v32, %v458_v47  ;;  %v584_v54 = vadd.f32 %v576_v42, %v565_v40  ;;  %v668_v55 = vadd.f32 %v662_v44, %v653_v43 }
  0x28   : > { %v707_v59 = vadd.f32 %v705_v38, %v703_v45  ;;  %v578_v60 = vmul.f32 %v1224_v1, %v1253_v6  ;;  %v597_v63 = vmul.f32 %v1239_v3, %v1321_v29  ;;  %v614_v24 = vmul.f32 %v1244_v4, %v505_v35 }
  0x29   : > { %v536_v17 = vrot.slane %v1427_v52, 7  ;;  %v542_v21 = vrot.slane %v1427_v52, 1  ;;  %v543_v26 = vrot.slane %v1429_v53, 1  ;;  %v603_v28 = vadd.f32 %v595_v49, %v584_v54 }
  0x2a   : > { %v718_v31 = vadd.f32 %v716_v39, %v707_v59  ;;  %v683_v32 = vadd.f32 %v677_v50, %v668_v55  ;;  %v691_v33 = vmul.f32 %v1249_v5, %v1427_v52  ;;  %v586_v34 = vadd.f32 %v578_v60, %v567_v51 }
  0x2b   : > { %v740_v37 = vld [vmem:[#allocation2 + $0x20] sm:$0xff]  ;;  %v541_v29 = vsel %vm484_vm0, 0.0, %v536_v17  ;;  %v544_v35 = vsel %vm509_vm1, %v542_v21, %v543_v26  ;;  %v623_v38 = vmul.f32 %v1249_v5, %v1364_v48  ;;  %v638_v40 = vmul.f32 %v1264_v9, %v512_v41 }
  0x2c   : > { %v752_v39 = vadd.f32 %v1434_v58, %v740_v37  ;;  %721 = vst.msk [vmem:[#allocation2 + $0x30] sm:$0xff] %vm713_vm2, %v718_v31  ;;  %v689_v42 = vmul.f32 %v1244_v4, %v541_v29  ;;  %v695_v43 = vmul.f32 %v1264_v9, %v544_v35  ;;  %v709_v44 = vadd.f32 %v683_v32, %v603_v28 }
  0x2d   : > { %v605_v45 = vadd.f32 %v597_v63, %v586_v34  ;;  %v629_v46 = vadd.f32 %v623_v38, %v614_v24  ;;  %v655_v47 = vmul.f32 %v1269_v10, %v1309_v25  ;;  %v664_v49 = vmul.f32 %v1274_v11, %v1259_v8 }
  0x2e   : > { %v760_v50 = vmax.f32 %v752_v39, 0.0  ;;  %v693_v51 = vadd.f32 %v691_v33, %v689_v42  ;;  %v679_v41 = vmul.f32 %v1299_v23, %v1326_v30  ;;  %v489_v54 = vrot.slane %v1256_v7, 7 }
  0x2f   : > { %v644_v55 = vadd.f32 %v638_v40, %v629_v46  ;;  %v670_v59 = vadd.f32 %v664_v49, %v655_v47  ;;  %v492_v60 = vrot.slane %v1279_v12, 7  ;;  %v495_v63 = vrot.slane %v1285_v14, 7 }
  0x30   : > { %v768_v24 = vmin.f32 %v760_v50, 6.0  ;;  %v697_v21 = vadd.f32 %v695_v43, %v693_v51  ;;  %v1471_v25 = vsel %vm484_vm0, %v488_v15, %v489_v54  ;;  %v1476_v28 = vsel %vm509_vm1, %v514_v20, 0.0 }
  0x31   : > { %v685_v30 = vadd.f32 %v679_v41, %v670_v59  ;;  %v723_v31 = vadd.f32 %v644_v55, %v605_v45  ;;  %v1481_v32 = vsel %vm484_vm0, %v491_v16, %v492_v60  ;;  %v496_v33 = vsel %vm484_vm0, %v494_v19, %v495_v63 }
  0x32   : > { %1025 = vmatmul.msk.f32.vlgmr.msra.gmra.mxu2 %vm713_vm2, %v768_v24  ;;  %v711_v6 = vadd.f32 %v709_v44, %v697_v21  ;;  %v1490_v15 = vsel %vm509_vm1, %v517_v22, 0.0  ;;  %v533_v20 = vsel %vm509_vm1, %v520_v27, 0.0  ;;  %v570_v8 = vmul.f32 %v1229_v2, %v1481_v32 }
  0x33   : > { %v742_v16 = vld [vmem:[#allocation2 + $0x30] sm:$0xff]  ;;  %v727_v34 = vadd.f32 %v723_v31, %v685_v30  ;;  %v581_v13 = vmul.f32 %v1224_v1, %v1279_v12  ;;  %v600_v19 = vmul.f32 %v1239_v3, %v1490_v15  ;;  %v617_v37 = vmul.f32 %v1244_v4, %v1471_v25 }
  0x34   : > { %v754_v22 = vadd.f32 %v1434_v58, %v742_v16  ;;  %714 = vst.msk [vmem:[#allocation2] sm:$0xff] %vm713_vm2, %v711_v6  ;;  %v626_v27 = vmul.f32 %v1249_v5, %v1256_v7  ;;  %v641_v29 = vmul.f32 %v1264_v9, %v1476_v28  ;;  %v658_v35 = vmul.f32 %v1269_v10, %v496_v33 }
  0x35   : > { %732 = vst.msk [vmem:[#allocation2 + $0x10] sm:$0xff] %vm713_vm2, %v727_v34  ;;  %v589_v38 = vadd.f32 %v581_v13, %v570_v8  ;;  %v667_v40 = vmul.f32 %v1274_v11, %v1285_v14  ;;  %v682_v39 = vmul.f32 %v1299_v23, %v533_v20  ;;  %v551_v42 = vrot.slane %v1378_v57, 7 }
  0x36   : > { %v762_v43 = vmax.f32 %v754_v22, 0.0  ;;  %v632_v44 = vadd.f32 %v626_v27, %v617_v37  ;;  %v561_v45 = vsel %vm509_vm1, %v557_v18, 0.0  ;;  %v572_v46 = vmul.f32 %v1229_v2, %v496_v33 }
  0x37   : > { %v608_v47 = vadd.f32 %v600_v19, %v589_v38  ;;  %v673_v49 = vadd.f32 %v667_v40, %v658_v35  ;;  %v552_v50 = vsel %vm484_vm0, %v550_v0, %v551_v42  ;;  %v583_v51 = vmul.f32 %v1224_v1, %v1285_v14 }
  0x38   : > { %v770_v41 = vmin.f32 %v762_v43, 6.0  ;;  %v647_v54 = vadd.f32 %v641_v29, %v632_v44  ;;  %v602_v55 = vmul.f32 %v1239_v3, %v533_v20  ;;  %v619_v59 = vmul.f32 %v1244_v4, %v1481_v32 }
  0x39   : > { %v688_v60 = vadd.f32 %v682_v39, %v673_v49  ;;  %v591_v18 = vadd.f32 %v583_v51, %v572_v46  ;;  %v628_v63 = vmul.f32 %v1249_v5, %v1279_v12  ;;  %v643_v56 = vmul.f32 %v1264_v9, %v1490_v15 }
  0x3a   : > { %1027 = vmatmul.msk.f32.vlgmr.msra.gmra.mxu3 %vm713_vm2, %v770_v41  ;;  %v726_v0 = vadd.f32 %v647_v54, %v608_v47  ;;  %v700_v14 = vmul.f32 %v1269_v10, %v552_v50  ;;  %v702_v24 = vmul.f32 %v1274_v11, %v1378_v57  ;;  %v706_v21 = vmul.f32 %v1299_v23, %v561_v45 }
  0x3b   : > { %v736_v30 = vld [vmem:[#allocation2] sm:$0xff]  ;;  %v610_v31 = vadd.f32 %v602_v55, %v591_v18  ;;  %v634_v33 = vadd.f32 %v628_v63, %v619_v59  ;;  %v486_v6 = vrot.slane %v1385_v61, 7  ;;  %v530_v20 = vsel %vm509_vm1, %v511_v36, 0.0 }
  0x3c   : > { %v748_v8 = vadd.f32 %v1434_v58, %v736_v30  ;;  %v738_v16 = vld [vmem:[#allocation2 + $0x10] sm:$0xff]  ;;  %v730_v34 = vadd.f32 %v726_v0, %v688_v60  ;;  %v704_v13 = vadd.f32 %v702_v24, %v700_v14  ;;  %v537_v19 = vrot.slane %v1429_v53, 7 }
  0x3d   : > { %v750_v57 = vadd.f32 %v1434_v58, %v738_v16  ;;  %v649_v37 = vadd.f32 %v643_v56, %v634_v33  ;;  %v487_v22 = vsel %vm484_vm0, %v485_v62, %v486_v6  ;;  %v547_v27 = vsel %vm509_vm1, %v543_v26, 0.0 }
  0x3e   : > { %v756_v29 = vmax.f32 %v748_v8, 0.0  ;;  %735 = vst.msk [vmem:[#allocation2 + $0x28] sm:$0xff] %vm713_vm2, %v730_v34  ;;  %v708_v36 = vadd.f32 %v706_v21, %v704_v13  ;;  %v538_v35 = vsel %vm484_vm0, %v536_v17, %v537_v19  ;;  %v566_v38 = vmul.f32 %v1229_v2, %v487_v22  ;;  %v1092_v19 = vld [vmem:[%s1633_s6] ss:$0 sm:$0xff] }
  0x3f   : > { %v758_v40 = vmax.f32 %v750_v57, 0.0  ;;  %v717_v39 = vadd.f32 %v649_v37, %v610_v31  ;;  %v577_v48 = vmul.f32 %v1224_v1, %v1385_v61  ;;  %v596_v62 = vmul.f32 %v1239_v3, %v530_v20 }
  0x40   : > { %v764_v42 = vmin.f32 %v756_v29, 6.0  ;;  %v654_v26 = vmul.f32 %v1269_v10, %v1471_v25  ;;  %v663_v43 = vmul.f32 %v1274_v11, %v1256_v7  ;;  %v678_v52 = vmul.f32 %v1299_v23, %v1476_v28 }
  0x41   : > { %v766_v17 = vmin.f32 %v758_v40, 6.0  ;;  %v719_v44 = vadd.f32 %v717_v39, %v708_v36  ;;  %v585_v45 = vadd.f32 %v577_v48, %v566_v38  ;;  %v690_v46 = vmul.f32 %v1244_v4, %v538_v35 }
  0x42   : > { %1021 = vmatmul.msk.f32.vlgmr.msra.gmra.mxu0 %vm713_vm2, %v764_v42  ;;  %v669_v47 = vadd.f32 %v663_v43, %v654_v26  ;;  %v692_v49 = vmul.f32 %v1249_v5, %v1429_v53  ;;  %v696_v50 = vmul.f32 %v1264_v9, %v547_v27  ;;  %v568_v51 = vmul.f32 %v1229_v2, %v1471_v25 }
  0x43   : > { %1023 = vmatmul.msk.f32.vlgmr.msra.gmra.mxu1 %vm713_vm2, %v766_v17  ;;  %722 = vst.msk [vmem:[#allocation2 + $0x38] sm:$0xff] %vm713_vm2, %v719_v44  ;;  %v604_v41 = vadd.f32 %v596_v62, %v585_v45  ;;  %v579_v54 = vmul.f32 %v1224_v1, %v1256_v7  ;;  %v598_v55 = vmul.f32 %v1239_v3, %v1476_v28 }
  0x44   : > { %v684_v59 = vadd.f32 %v678_v52, %v669_v47  ;;  %v694_v60 = vadd.f32 %v692_v49, %v690_v46  ;;  %v615_v53 = vmul.f32 %v1244_v4, %v487_v22  ;;  %v624_v18 = vmul.f32 %v1249_v5, %v1385_v61 }
  0x45   : > { %v741_v63 = vld [vmem:[#allocation2 + $0x28] sm:$0xff]  ;;  %v587_v2 = vadd.f32 %v579_v54, %v568_v51  ;;  %v639_v25 = vmul.f32 %v1264_v9, %v530_v20  ;;  %v656_v56 = vmul.f32 %v1269_v10, %v1481_v32  ;;  %v665_v1 = vmul.f32 %v1274_v11, %v1279_v12 }
  0x46   : > { %v753_v7 = vadd.f32 %v1434_v58, %v741_v63  ;;  %v698_v3 = vadd.f32 %v696_v50, %v694_v60  ;;  %v710_v28 = vadd.f32 %v684_v59, %v604_v41  ;;  %v630_v0 = vadd.f32 %v624_v18, %v615_v53 }
  0x47   : > { %v606_v14 = vadd.f32 %v598_v55, %v587_v2  ;;  %v671_v4 = vadd.f32 %v665_v1, %v656_v56  ;;  %v680_v5 = vmul.f32 %v1299_v23, %v1490_v15 }
  0x48   : > { %v761_v61 = vmax.f32 %v753_v7, 0.0  ;;  %v712_v24 = vadd.f32 %v710_v28, %v698_v3  ;;  %v645_v21 = vadd.f32 %v639_v25, %v630_v0 }
  0x49   : > { %v686_v9 = vadd.f32 %v680_v5, %v671_v4 }
  0x4a   : > { %v769_v30 = vmin.f32 %v761_v61, 6.0  ;;  %v743_v31 = vld [vmem:[#allocation2 + $0x38] sm:$0xff]  ;;  %715 = vst.msk [vmem:[#allocation2 + $0x8] sm:$0xff] %vm713_vm2, %v712_v24  ;;  %v724_v10 = vadd.f32 %v645_v21, %v606_v14 }
  0x4b   : > { %v755_v11 = vadd.f32 %v1434_v58, %v743_v31 }
  0x4c   : > { %1026 = vmatmul.msk.f32.gmra.mxu2 %vm713_vm2, %v769_v30  ;;  %v728_v12 = vadd.f32 %v724_v10, %v686_v9 }
  0x4d   : > { %v763_v32 = vmax.f32 %v755_v11, 0.0 }
  0x4e   : > { %733 = vst.msk [vmem:[#allocation2 + $0x18] sm:$0xff] %vm713_vm2, %v728_v12 }
  0x4f   : > { %v771_v23 = vmin.f32 %v763_v32, 6.0 }
  0x51   : > { %1028 = vmatmul.msk.f32.gmra.mxu3 %vm713_vm2, %v771_v23  ;;  %v737_v15 = vld [vmem:[#allocation2 + $0x8] sm:$0xff] }
  0x52   : > { %v749_v33 = vadd.f32 %v1434_v58, %v737_v15 }
  0x54   : > { %v757_v6 = vmax.f32 %v749_v33, 0.0 }
  0x55   : > { %v739_v20 = vld [vmem:[#allocation2 + $0x18] sm:$0xff] }
  0x56   : > { %v765_v8 = vmin.f32 %v757_v6, 6.0  ;;  %v751_v16 = vadd.f32 %v1434_v58, %v739_v20 }
  0x58   : > { %1022 = vmatmul.msk.f32.gmra.mxu0 %vm713_vm2, %v765_v8  ;;  %v759_v34 = vmax.f32 %v751_v16, 0.0 }
  0x5a   : > { %v767_v13 = vmin.f32 %v759_v34, 6.0 }
  0x5c   : > { %1024 = vmatmul.msk.f32.gmra.mxu1 %vm713_vm2, %v767_v13 }
  0xb5   : > { %v830_v58 = vpop.f32.mrf.mxu2 }
  0xb6   : > { %v831_v57 = vadd.f32 %v1092_v19, %v830_v58 }
  0xb8   : > { %847 = vst.msk [vmem:[%s443_s20 + $0x20] sm:$0xff] %vm842_vm3, %v831_v57 }
  0xbd   : > { %v836_v37 = vpop.f32.mrf.mxu3 }
  0xbe   : > { %v837_v22 = vadd.f32 %v1092_v19, %v836_v37 }
  0xbf   : > { %v818_v27 = vpop.f32.mrf.mxu0 }
  0xc0   : > { %v819_v29 = vadd.f32 %v1092_v19, %v818_v27  ;;  %v824_v36 = vpop.f32.mrf.mxu1  ;;  %849 = vst.msk [vmem:[%s443_s20 + $0x30] sm:$0xff] %vm842_vm3, %v837_v22 }
  0xc1   : > { %v825_v35 = vadd.f32 %v1092_v19, %v824_v36 }
  0xc2   : > { %843 = vst.msk [vmem:[%s443_s20] sm:$0xff] %vm842_vm3, %v819_v29 }
  0xc3   : > { %845 = vst.msk [vmem:[%s443_s20 + $0x10] sm:$0xff] %vm842_vm3, %v825_v35 }
  0xcf   : > { %v833_v38 = vpop.f32.mrf.mxu2 }
  0xd0   : > { %v834_v40 = vadd.f32 %v1092_v19, %v833_v38 }
  0xd2   : > { %848 = vst.msk [vmem:[%s443_s20 + $0x28] sm:$0xff] %vm842_vm3, %v834_v40 }
  0xd4   : > { %v839_v39 = vpop.f32.mrf.mxu3 }
  0xd5   : > { %v821_v48 = vpop.f32.mrf.mxu0  ;;  %v840_v62 = vadd.f32 %v1092_v19, %v839_v39 }
  0xd6   : > { %v822_v42 = vadd.f32 %v1092_v19, %v821_v48 }
  0xd7   : > { %850 = vst.msk [vmem:[%s443_s20 + $0x38] sm:$0xff] %vm842_vm3, %v840_v62 }
  0xd8   : > { %844 = vst.msk [vmem:[%s443_s20 + $0x8] sm:$0xff] %vm842_vm3, %v822_v42 }
  0xd9   : > { %v827_v26 = vpop.f32.mrf.mxu1 }
  0xda   : > { %v828_v43 = vadd.f32 %v1092_v19, %v827_v26 }
  0xdc   : > { %846 = vst.msk [vmem:[%s443_s20 + $0x18] sm:$0xff] %vm842_vm3, %v828_v43 }
  0xdd PF: > { %s17_s28 = sadd.s32 1, %s1131_s28   ;;  %s1636_s24 = smov %s1123_s26 }
  0xde   : > { %p14_p13 = scmp.ge.s32.totalorder %s17_s28, 10   ;;  %s1637_s25 = smov %s1127_s27 }
  0xdf   : > { %s1638_s26 = smov %s1641_s29  ;;  %s1639_s27 = smov %s1645_s30 }
  0xe0   :  { %16 = sbr.rel (!%p14_p13) target bundleno = 3 (0x3), region = 86 }

</bundles_post_ra>
